<compile_context>
chip_gen: v5e
topology: v5e:2x2
jax: 0.10.0
libtpu: 0.0.40
codegen_flags: <defaults>
</compile_context>

<pallas_src>
import functools

import jax
import jax.numpy as jnp
from jax.experimental import pallas as pl
from jax.experimental.pallas import tpu as pltpu


# ----------------------------------------------------------------------------- helpers
def _round_up(x, m):
    return ((x + m - 1) // m) * m


def _cdiv(a, b):
    return -(-a // b)


@functools.lru_cache(maxsize=1)
def _vmem_budget_bytes():
    """Generation-aware VMEM budget (v5e/v6e: 128 MiB parts, v7x: 64 MiB/TC)."""
    cap = 64 * 1024 * 1024  # conservative default (v7x per-TC)
    try:
        info = pltpu.get_tpu_info()
        cap = int(getattr(info, "vmem_capacity_bytes", cap))
    except Exception:
        pass
    # ~20% headroom for Mosaic-internal scratch / semaphores.
    return max(int(cap * 0.8), 16 * 1024 * 1024)


def _buffered1_supported():
    """Probe whether BlockSpec(pipeline_mode=pl.Buffered(1)) exists in this JAX."""
    if not hasattr(pl, "Buffered"):
        return False
    try:
        pl.BlockSpec((8, 128), lambda i: (0, 0), pipeline_mode=pl.Buffered(1))
        return True
    except Exception:
        return False


_BUFFERED1_OK = _buffered1_supported()


def _resident_spec(block_shape, index_map):
    """Constant-index block: single-buffer it when possible (halves its VMEM)."""
    if _BUFFERED1_OK:
        return pl.BlockSpec(block_shape, index_map, pipeline_mode=pl.Buffered(1))
    return pl.BlockSpec(block_shape, index_map)


# ----------------------------------------------------------------------------- kernels
def _highway_kernel(x_ref, w_ref, b_ref, o_ref):
    """Resident-weight path: one fused (proj|gate) MXU pass per batch tile.

    x_ref: (TB, Ep)    native dtype
    w_ref: (Ep, 2*Ep)  fused [Wp.T | Wg.T], native dtype, resident in VMEM
    b_ref: (1, 2*Ep)   fused [bp | bg], f32
    o_ref: (TB, Ep)
    """
    ep = o_ref.shape[-1]
    x = x_ref[...]  # native dtype feeds the MXU directly (no f32 upcast)
    acc = jnp.dot(x, w_ref[...], preferred_element_type=jnp.float32) + b_ref[...]

    proj = jnp.maximum(acc[:, :ep], 0.0)   # relu     (VPU)
    gate = jax.nn.sigmoid(acc[:, ep:])     # sigmoid  (EUP)

    xf = x.astype(jnp.float32)
    # g*p + (1-g)*x  ==  x + g*(p - x)   (one fewer multiply)
    o_ref[...] = (xf + gate * (proj - xf)).astype(o_ref.dtype)


def _highway_kernel_ktiled(x_mm_ref, x_full_ref, w_ref, b_ref, o_ref, acc_ref):
    """K-tiled path: weights streamed over the contraction axis, f32 accumulator.

    x_mm_ref:   (TB, TK)     x chunk for the MXU           (streamed over k)
    x_full_ref: (TB, Ep)     full x tile for the blend     (fetched once per i)
    w_ref:      (TK, 2*Ep)   fused weight slab             (streamed over k)
    b_ref:      (1, 2*Ep)    fused biases, f32             (resident)
    o_ref:      (TB, Ep)
    acc_ref:    (TB, 2*Ep)   f32 VMEM scratch accumulator
    """
    ep = o_ref.shape[-1]
    k = pl.program_id(1)

    @pl.when(k == 0)
    def _():
        acc_ref[...] = jnp.broadcast_to(b_ref[...], acc_ref.shape)

    acc_ref[...] += jnp.dot(x_mm_ref[...], w_ref[...],
                            preferred_element_type=jnp.float32)

    @pl.when(k == pl.num_programs(1) - 1)
    def _():
        acc = acc_ref[...]
        proj = jnp.maximum(acc[:, :ep], 0.0)
        gate = jax.nn.sigmoid(acc[:, ep:])
        xf = x_full_ref[...].astype(jnp.float32)
        o_ref[...] = (xf + gate * (proj - xf)).astype(o_ref.dtype)


# ----------------------------------------------------------------------------- config
def _choose_config(B, Ep, itemsize, single_buf_w, force_k_tiling=False, k_block=None):
    """Pick (TB, TK-or-None, vmem_need) for the given shapes and VMEM budget."""
    budget = _vmem_budget_bytes()

    # Batch tile: ~2 MiB of activations, clamped to [256, 1024], sublane aligned,
    # capped at the batch, and split >= 2 ways so both v7x TensorCores get work.
    b8 = _round_up(B, 8)
    tb = (2 * 1024 * 1024) // max(Ep * itemsize, 1)
    tb = max(256, min(1024, tb))
    tb = _round_up(tb, 8)
    tb = min(tb, b8)
    if b8 > 8:
        tb = min(tb, _round_up(_cdiv(b8, 2), 8))
    tb = max(tb, 8)

    bias_bytes = 2 * (2 * Ep) * 4
    headroom = 2 << 20

    def resident_need(tb_):
        wbufs = 1 if single_buf_w else 2
        return (2 * 2 * tb_ * Ep * itemsize          # x / out tiles, double buffered
                + wbufs * Ep * (2 * Ep) * itemsize   # resident fused weights
                + bias_bytes
                + tb_ * (2 * Ep) * 4                 # f32 matmul result
                + tb_ * Ep * 4                       # f32 x copy for the blend
                + headroom)

    def ktiled_need(tb_, tk_):
        return (2 * 2 * tb_ * Ep * itemsize          # x_full / out tiles
                + 2 * tb_ * tk_ * itemsize           # x K-chunks, double buffered
                + 2 * tk_ * (2 * Ep) * itemsize      # streamed weight slabs
                + bias_bytes
                + tb_ * (2 * Ep) * 4                 # f32 accumulator scratch
                + tb_ * Ep * 4
                + headroom)

    if not force_k_tiling:
        tb_r = tb
        while tb_r > 8 and resident_need(tb_r) > budget:
            tb_r = max(8, _round_up(tb_r // 2, 8))
        if resident_need(tb_r) <= budget:
            return tb_r, None, resident_need(tb_r)

    # K-tiled fallback: largest TK (multiple of 128, divides Ep) that fits.
    tb_k = tb
    if k_block is not None:
        assert k_block % 128 == 0 and Ep % k_block == 0
        tk = k_block
    else:
        m = Ep // 128
        tk = 128
        for d in range(m, 0, -1):
            if m % d == 0 and ktiled_need(tb_k, 128 * d) <= budget:
                tk = 128 * d
                break
    while tb_k > 8 and ktiled_need(tb_k, tk) > budget:
        tb_k = max(8, _round_up(tb_k // 2, 8))
    return tb_k, tk, ktiled_need(tb_k, tk)


# ----------------------------------------------------------------------------- wrappers
def fuse_highway_params(w_proj, b_proj, w_gate, b_gate, *, dtype=None):
    """Pre-transpose, pad and fuse the two Linear layers ONCE (hoisted out of the
    per-call path).  Returns w_cat=(Ep, 2*Ep) = [Wp.T | Wg.T], b_cat=(1, 2*Ep) f32."""
    E = w_proj.shape[0]
    if dtype is None:
        dtype = w_proj.dtype
    Ep = _round_up(max(E, 128), 128)

    def pad_w(w):
        return jnp.pad(w.T.astype(dtype), ((0, Ep - E), (0, Ep - E)))

    def pad_b(b):
        return jnp.pad(b.astype(jnp.float32), (0, Ep - E))

    w_cat = jnp.concatenate([pad_w(w_proj), pad_w(w_gate)], axis=1)   # (Ep, 2*Ep)
    b_cat = jnp.concatenate([pad_b(b_proj), pad_b(b_gate)])[None, :]  # (1, 2*Ep)
    return w_cat, b_cat


def highway_fused(x, w_cat, b_cat, *, force_k_tiling=False, k_block=None):
    """Highway forward from pre-fused parameters (see fuse_highway_params)."""
    B, E = x.shape
    dtype = x.dtype
    itemsize = jnp.dtype(dtype).itemsize
    Ep = w_cat.shape[0]
    assert w_cat.shape == (Ep, 2 * Ep) and b_cat.shape == (1, 2 * Ep) and E <= Ep

    if w_cat.dtype != dtype:
        w_cat = w_cat.astype(dtype)          # keep MXU operands in the native dtype
    if b_cat.dtype != jnp.float32:
        b_cat = b_cat.astype(jnp.float32)

    TB, TK, vmem_need = _choose_config(B, Ep, itemsize, _BUFFERED1_OK,
                                       force_k_tiling=force_k_tiling, k_block=k_block)
    Bp = _round_up(B, TB)

    # Pad only when necessary: skip the extra HBM sweep when already aligned.
    padded = (Bp, Ep) != (B, E)
    x_in = jnp.pad(x, ((0, Bp - B), (0, Ep - E))) if padded else x

    cost = pl.CostEstimate(
        flops=2 * Bp * Ep * (2 * Ep),
        transcendentals=Bp * Ep,
        bytes_accessed=(x_in.size + w_cat.size + Bp * Ep) * itemsize + b_cat.size * 4,
    )
    vmem_limit = int(max(vmem_need, 16 * 1024 * 1024))

    if TK is None:
        # Resident-weight path: grid over batch tiles only.
        grid = (Bp // TB,)
        kernel = _highway_kernel
        in_specs = [
            pl.BlockSpec((TB, Ep), lambda i: (i, 0)),            # x tiles (pipelined)
            _resident_spec((Ep, 2 * Ep), lambda i: (0, 0)),      # fused weights
            _resident_spec((1, 2 * Ep), lambda i: (0, 0)),       # fused biases
        ]
        out_specs = pl.BlockSpec((TB, Ep), lambda i: (i, 0))
        scratch = []
        dims = ("parallel",)
        operands = (x_in, w_cat, b_cat)
    else:
        # K-tiled path: weights streamed over the contraction axis.
        grid = (Bp // TB, Ep // TK)
        kernel = _highway_kernel_ktiled
        in_specs = [
            pl.BlockSpec((TB, TK), lambda i, k: (i, k)),         # x chunks for the MXU
            pl.BlockSpec((TB, Ep), lambda i, k: (i, 0)),         # x for blend (1 fetch/i)
            pl.BlockSpec((TK, 2 * Ep), lambda i, k: (k, 0)),     # streamed weight slabs
            _resident_spec((1, 2 * Ep), lambda i, k: (0, 0)),    # fused biases
        ]
        out_specs = pl.BlockSpec((TB, Ep), lambda i, k: (i, 0))
        scratch = [pltpu.VMEM((TB, 2 * Ep), jnp.float32)]
        dims = ("parallel", "arbitrary")
        operands = (x_in, x_in, w_cat, b_cat)

    out = pl.pallas_call(
        kernel,
        out_shape=jax.ShapeDtypeStruct((Bp, Ep), dtype),
        grid_spec=pltpu.PrefetchScalarGridSpec(
            num_scalar_prefetch=0,
            grid=grid,
            in_specs=in_specs,
            out_specs=out_specs,
            scratch_shapes=scratch,
        ),
        compiler_params=pltpu.CompilerParams(
            dimension_semantics=dims,
            vmem_limit_bytes=vmem_limit,
        ),
        cost_estimate=cost,
    )(*operands)

    return out[:B, :E] if padded else out


def highway(x, w_proj, b_proj, w_gate, b_gate):
    """One-shot convenience wrapper (prefer fuse_highway_params + highway_fused)."""
    w_cat, b_cat = fuse_highway_params(w_proj, b_proj, w_gate, b_gate, dtype=x.dtype)
    return highway_fused(x, w_cat, b_cat)


def highway_ref(x, w_proj, b_proj, w_gate, b_gate):
    """Pure-JAX reference matching the PyTorch forward exactly."""
    x_proj = jax.nn.relu(x @ w_proj.T + b_proj)
    x_gate = jax.nn.sigmoid(x @ w_gate.T + b_gate)
    return x_gate * x_proj + (1.0 - x_gate) * x


if __name__ == "__main__":
    key = jax.random.PRNGKey(0)
    keys = jax.random.split(key, 10)

    # --- small shapes matching the PyTorch module: (batch_size, e_word) -----------
    batch, e_word = 8, 32
    bound = 1.0 / jnp.sqrt(e_word)
    x = jax.random.normal(keys[0], (batch, e_word), dtype=jnp.float32)
    w_proj = jax.random.uniform(keys[1], (e_word, e_word), minval=-bound, maxval=bound)
    b_proj = jax.random.uniform(keys[2], (e_word,), minval=-bound, maxval=bound)
    w_gate = jax.random.uniform(keys[3], (e_word, e_word), minval=-bound, maxval=bound)
    b_gate = jax.random.uniform(keys[4], (e_word,), minval=-bound, maxval=bound)

    w_cat, b_cat = fuse_highway_params(w_proj, b_proj, w_gate, b_gate)  # fused ONCE
    out = jax.block_until_ready(highway_fused(x, w_cat, b_cat))
    ref = highway_ref(x, w_proj, b_proj, w_gate, b_gate)
    assert out.shape == (batch, e_word)
    assert jnp.allclose(out, ref, atol=1e-5, rtol=1e-5), "resident path mismatch"

    # --- exercise the K-tiled (streamed-weights) fallback path as well ------------
    B2, E2 = 256, 256
    bound2 = 1.0 / jnp.sqrt(E2)
    x2 = jax.random.normal(keys[5], (B2, E2), dtype=jnp.float32)
    w_proj2 = jax.random.uniform(keys[6], (E2, E2), minval=-bound2, maxval=bound2)
    b_proj2 = jax.random.uniform(keys[7], (E2,), minval=-bound2, maxval=bound2)
    w_gate2 = jax.random.uniform(keys[8], (E2, E2), minval=-bound2, maxval=bound2)
    b_gate2 = jax.random.uniform(keys[9], (E2,), minval=-bound2, maxval=bound2)
    w_cat2, b_cat2 = fuse_highway_params(w_proj2, b_proj2, w_gate2, b_gate2)
    out2 = jax.block_until_ready(
        highway_fused(x2, w_cat2, b_cat2, force_k_tiling=True, k_block=128))
    ref2 = highway_ref(x2, w_proj2, b_proj2, w_gate2, b_gate2)
    assert out2.shape == (B2, E2)
    assert jnp.allclose(out2, ref2, atol=1e-4, rtol=1e-4), "K-tiled path mismatch"

    print("KERNEL_OK")
</pallas_src>

<mosaic_0001>
module attributes {stable_mosaic.version = 11 : i64} {
  func.func @_highway_kernel(%arg0: i32, %arg1: memref<8x128xf32, #tpu.memory_space<vmem>>, %arg2: memref<128x256xf32, #tpu.memory_space<vmem>>, %arg3: memref<1x256xf32, #tpu.memory_space<vmem>>, %arg4: memref<8x128xf32, #tpu.memory_space<vmem>>) attributes {dimension_semantics = [#tpu.dimension_semantics<parallel>], iteration_bounds = array<i64: 1>, scalar_prefetch = 0 : i64, scratch_operands = 0 : i64, tpu.core_type = #tpu.core_type<tc>, window_params = [{transform_indices = @transform_0, window_bounds = array<i64: 8, 128>}, {pipeline_mode = #tpu.pipeline_mode<synchronous>, transform_indices = @transform_1, window_bounds = array<i64: 128, 256>}, {pipeline_mode = #tpu.pipeline_mode<synchronous>, transform_indices = @transform_2, window_bounds = array<i64: 1, 256>}, {transform_indices = @transform_3, window_bounds = array<i64: 8, 128>}]} {
    %c0 = arith.constant 0 : index
    %c0_0 = arith.constant 0 : index
    %0 = vector.load %arg1[%c0, %c0_0] : memref<8x128xf32, #tpu.memory_space<vmem>>, vector<8x128xf32>
    %c0_1 = arith.constant 0 : index
    %c0_2 = arith.constant 0 : index
    %1 = vector.load %arg2[%c0_1, %c0_2] : memref<128x256xf32, #tpu.memory_space<vmem>>, vector<128x256xf32>
    %cst = arith.constant dense<0.000000e+00> : vector<8x256xf32>
    %2 = tpu.matmul %0, %1, %cst {dimension_numbers = #tpu.dot_dimension_numbers<[1], [0], [0], [1], [0, 0, 1, 1], [], []>} : vector<8x128xf32>, vector<128x256xf32>, vector<8x256xf32> -> vector<8x256xf32>
    %c0_3 = arith.constant 0 : index
    %c0_4 = arith.constant 0 : index
    %3 = vector.load %arg3[%c0_3, %c0_4] : memref<1x256xf32, #tpu.memory_space<vmem>>, vector<1x256xf32>
    %4 = vector.broadcast %3 : vector<1x256xf32> to vector<8x256xf32>
    %5 = arith.addf %2, %4 : vector<8x256xf32>
    %6 = vector.extract_strided_slice %5 {offsets = [0, 0], sizes = [8, 128], strides = [1, 1]} : vector<8x256xf32> to vector<8x128xf32>
    %cst_5 = arith.constant 0.000000e+00 : f32
    %7 = vector.broadcast %cst_5 : f32 to vector<8x128xf32>
    %8 = arith.maximumf %6, %7 : vector<8x128xf32>
    %9 = vector.extract_strided_slice %5 {offsets = [0, 128], sizes = [8, 128], strides = [1, 1]} : vector<8x256xf32> to vector<8x128xf32>
    %10 = arith.negf %9 : vector<8x128xf32>
    %11 = math.exp %10 : vector<8x128xf32>
    %cst_6 = arith.constant 1.000000e+00 : f32
    %12 = vector.broadcast %cst_6 : f32 to vector<8x128xf32>
    %13 = arith.addf %12, %11 : vector<8x128xf32>
    %14 = arith.divf %12, %13 : vector<8x128xf32>
    %15 = arith.subf %8, %0 : vector<8x128xf32>
    %16 = arith.mulf %14, %15 : vector<8x128xf32>
    %17 = arith.addf %0, %16 : vector<8x128xf32>
    %c0_7 = arith.constant 0 : index
    %c0_8 = arith.constant 0 : index
    %18 = vector.load %arg4[%c0_7, %c0_8] : memref<8x128xf32, #tpu.memory_space<vmem>>, vector<8x128xf32>
    tpu.vector_store %arg4[%c0_7, %c0_8], %17 {strides = array<i32>} : memref<8x128xf32, #tpu.memory_space<vmem>>, vector<8x128xf32>,
    return
  }
  func.func @transform_0(%arg0: i32) -> (i32, i32) {
    %c0_i32 = arith.constant 0 : i32
    %c0_i32_0 = arith.constant 0 : i32
    return %arg0, %c0_i32 : i32, i32
  }
  func.func @transform_1(%arg0: i32) -> (i32, i32) {
    %c0_i32 = arith.constant 0 : i32
    %c0_i32_0 = arith.constant 0 : i32
    %c0_i32_1 = arith.constant 0 : i32
    return %c0_i32, %c0_i32_0 : i32, i32
  }
  func.func @transform_2(%arg0: i32) -> (i32, i32) {
    %c0_i32 = arith.constant 0 : i32
    %c0_i32_0 = arith.constant 0 : i32
    %c0_i32_1 = arith.constant 0 : i32
    return %c0_i32, %c0_i32_0 : i32, i32
  }
  func.func @transform_3(%arg0: i32) -> (i32, i32) {
    %c0_i32 = arith.constant 0 : i32
    %c0_i32_0 = arith.constant 0 : i32
    return %arg0, %c0_i32 : i32, i32
  }
}

</mosaic_0001>

<bundles_post_ra>
// kernel: tpu_custom_call.1
= control target key start
LH: loop header
LB: loop body
LE: loop exit
PB: predicated region body
PF: predicated region fallthrough
CT: control target
= control target key end

     0   :  { %8 = vsyncpa [#allocation3], 0  ;;  %s330_s0 = inlined_call_operand.hbm [shape: f32[8,128], index: 0, kind: input, shape index: {}]   ;;  %s331_s1 = inlined_call_operand.hbm [shape: f32[128,256], index: 1, kind: input, shape index: {}]   ;;  %s332_s2 = inlined_call_operand.hbm [shape: f32[1,256], index: 2, kind: input, shape index: {}]   ;;  %s333_s3 = inlined_call_operand.hbm [shape: f32[8,128], index: 3, kind: output, shape index: {}]  }
   0x1   :  { %9 = vsyncpa [#allocation6], 0  ;;  %s26_s14 = sshll.u32 %s331_s1, 4  ;;  %s27_s14 = int_to_ptr.hbm [resolvable:$true] %s26_s14 }
   0x2   :  { %10 = vsyncpa [#allocation4], 0  ;;  %s292_s15 = smov [#allocation5]   ;;  %s16_s19 = sshll.u32 %s330_s0, 4  ;;  %s17_s19 = int_to_ptr.hbm [resolvable:$true] %s16_s19 }
   0x3   :  { %s28_s16 = sshll.u32 %s292_s15, 4  ;;  %s293_s20 = smov 256   ;;  %s29_s16 = int_to_ptr.vmem [resolvable:$true] %s28_s16 }
   0x4   :  { %s294_s21 = smov 16   ;;  %s295_s22 = smov [#allocation2]  }
   0x5   :  { %34 = dma.hbm_to_vmem [thread:$0]  %s27_s14, 4096, %s29_s16, [#allocation6], %s293_s20, %s293_s20, %s294_s21  }
   0x6   :  { %s18_s23 = sshll.u32 %s295_s22, 4  ;;  %s40_s26 = sshll.u32 %s332_s2, 4  ;;  %s19_s23 = int_to_ptr.vmem [resolvable:$true] %s18_s23  ;;  %s41_s26 = int_to_ptr.hbm [resolvable:$true] %s40_s26 }
   0x7   :  { %21 = dma.hbm_to_vmem [thread:$0]  %s17_s19, 128, %s19_s23, [#allocation3]  }
   0x8   :  { %s296_s1 = smov [#allocation7]  }
   0x9   :  { %s42_s27 = sshll.u32 %s296_s1, 4  ;;  %s43_s27 = int_to_ptr.vmem [resolvable:$true] %s42_s27 }
   0xa   :  { %45 = dma.hbm_to_vmem [thread:$0]  %s41_s26, 32, %s43_s27, [#allocation6]  }
   0xb   :  { %286 = dma.done.wait [#allocation3], 128  }
   0xc   :  { %287 = vsyncadd [#allocation3], 4294967168 }
   0xd   :  { %288 = dma.done.wait [#allocation6], 4128  }
   0xe   :  { %289 = vsyncadd [#allocation6], 4294963168  ;;  %v90_v0 = vld [vmem:[#allocation5 + $0xf8] sm:$0xff]  ;;  %v88_v1 = vld [vmem:[#allocation5 + $0xe8] sm:$0xff]  ;;  %s297_s0 = smov [#allocation8]   ;;  %s168_s30 = sshll.u32 %s333_s3, 4  ;;  %s169_s30 = int_to_ptr.hbm [resolvable:$true] %s168_s30 }
   0xf   :  { %117 = vmatpush.msra.mxu1 %v90_v0  ;;  %v86_v2 = vld [vmem:[#allocation5 + $0xd8] sm:$0xff]  ;;  %v84_v3 = vld [vmem:[#allocation5 + $0xc8] sm:$0xff]  ;;  %v89_v4 = vld [vmem:[#allocation5 + $0xf0] sm:$0xff]  ;;  %s166_s2 = sshll.u32 %s297_s0, 4  ;;  %s167_s2 = int_to_ptr.vmem [resolvable:$true] %s166_s2 }
  0x10   :  { %v87_v5 = vld [vmem:[#allocation5 + $0xe0] sm:$0xff]  ;;  %97 = vmatpush.msra.mxu0 %v89_v4  ;;  %v82_v6 = vld [vmem:[#allocation5 + $0xb8] sm:$0xff]  ;;  %v85_v7 = vld [vmem:[#allocation5 + $0xd0] sm:$0xff] }
  0x11   :  { %118 = vmatpush.msra.mxu1 %v88_v1  ;;  %v80_v8 = vld [vmem:[#allocation5 + $0xa8] sm:$0xff]  ;;  %v83_v9 = vld [vmem:[#allocation5 + $0xc0] sm:$0xff]  ;;  %v78_v10 = vld [vmem:[#allocation5 + $0x98] sm:$0xff] }
  0x12   :  { %98 = vmatpush.msra.mxu0 %v87_v5  ;;  %v81_v11 = vld [vmem:[#allocation5 + $0xb0] sm:$0xff]  ;;  %v76_v12 = vld [vmem:[#allocation5 + $0x88] sm:$0xff]  ;;  %v79_v13 = vld [vmem:[#allocation5 + $0xa0] sm:$0xff] }
  0x13   :  { %119 = vmatpush.msra.mxu1 %v86_v2  ;;  %v74_v14 = vld [vmem:[#allocation5 + $0x78] sm:$0xff]  ;;  %v77_v15 = vld [vmem:[#allocation5 + $0x90] sm:$0xff]  ;;  %v72_v16 = vld [vmem:[#allocation5 + $0x68] sm:$0xff] }
  0x14   :  { %99 = vmatpush.msra.mxu0 %v85_v7  ;;  %v75_v17 = vld [vmem:[#allocation5 + $0x80] sm:$0xff]  ;;  %v70_v18 = vld [vmem:[#allocation5 + $0x58] sm:$0xff]  ;;  %v73_v19 = vld [vmem:[#allocation5 + $0x70] sm:$0xff] }
  0x15   :  { %120 = vmatpush.msra.mxu1 %v84_v3  ;;  %v68_v20 = vld [vmem:[#allocation5 + $0x48] sm:$0xff]  ;;  %v71_v21 = vld [vmem:[#allocation5 + $0x60] sm:$0xff]  ;;  %v66_v22 = vld [vmem:[#allocation5 + $0x38] sm:$0xff] }
  0x16   :  { %100 = vmatpush.msra.mxu0 %v83_v9  ;;  %v69_v23 = vld [vmem:[#allocation5 + $0x50] sm:$0xff]  ;;  %v64_v24 = vld [vmem:[#allocation5 + $0x28] sm:$0xff]  ;;  %v67_v25 = vld [vmem:[#allocation5 + $0x40] sm:$0xff] }
  0x17   :  { %121 = vmatpush.msra.mxu1 %v82_v6  ;;  %v62_v26 = vld [vmem:[#allocation5 + $0x18] sm:$0xff]  ;;  %v65_v27 = vld [vmem:[#allocation5 + $0x30] sm:$0xff]  ;;  %v60_v28 = vld [vmem:[#allocation5 + $0x8] sm:$0xff] }
  0x18   :  { %101 = vmatpush.msra.mxu0 %v81_v11  ;;  %v63_v29 = vld [vmem:[#allocation5 + $0x20] sm:$0xff]  ;;  %v58_v30 = vld [vmem:[#allocation2] sm:$0xff]  ;;  %v61_v31 = vld [vmem:[#allocation5 + $0x10] sm:$0xff] }
  0x19   :  { %122 = vmatpush.msra.mxu1 %v80_v8  ;;  %v59_v32 = vld [vmem:[#allocation5] sm:$0xff] }
  0x1a   :  { %102 = vmatpush.msra.mxu0 %v79_v13  ;;  %v91_v33 = vld [vmem:[#allocation7] sm:$0x3] }
  0x1b   :  { %123 = vmatpush.msra.mxu1 %v78_v10  ;;  %v94_v34 = vperm.slane %v91_v33, 1  ;;  %v93_v40 = vperm.slane %v91_v33, 0 }
  0x1c   :  { %103 = vmatpush.msra.mxu0 %v77_v15 }
  0x1d   :  { %124 = vmatpush.msra.mxu1 %v76_v12 }
  0x1e   :  { %104 = vmatpush.msra.mxu0 %v75_v17 }
  0x1f   :  { %125 = vmatpush.msra.mxu1 %v74_v14 }
  0x20   :  { %105 = vmatpush.msra.mxu0 %v73_v19 }
  0x21   :  { %126 = vmatpush.msra.mxu1 %v72_v16 }
  0x22   :  { %106 = vmatpush.msra.mxu0 %v71_v21 }
  0x23   :  { %127 = vmatpush.msra.mxu1 %v70_v18 }
  0x24   :  { %107 = vmatpush.msra.mxu0 %v69_v23 }
  0x25   :  { %128 = vmatpush.msra.mxu1 %v68_v20 }
  0x26   :  { %108 = vmatpush.msra.mxu0 %v67_v25 }
  0x27   :  { %129 = vmatpush.msra.mxu1 %v66_v22 }
  0x28   :  { %109 = vmatpush.msra.mxu0 %v65_v27 }
  0x29   :  { %130 = vmatpush.msra.mxu1 %v64_v24 }
  0x2a   :  { %110 = vmatpush.msra.mxu0 %v63_v29 }
  0x2b   :  { %131 = vmatpush.msra.mxu1 %v62_v26 }
  0x2c   :  { %111 = vmatpush.msra.mxu0 %v61_v31 }
  0x2d   :  { %132 = vmatpush.msra.mxu1 %v60_v28 }
  0x2e   :  { %133 = vmatmul.f32.vlgmr.msra.gmra.mxu1 %v58_v30  ;;  %112 = vmatpush.msra.mxu0 %v59_v32 }
  0x2f   :  { %113 = vmatmul.f32.vlgmr.msra.gmra.mxu0 %v58_v30 }
  0xab   :  { %v134_v35 = vpop.f32.mrf.mxu1 }
  0xac   :  { %v135_v36 = vadd.f32 %v134_v35, %v94_v34  ;;  %v114_v41 = vpop.f32.mrf.mxu0 }
  0xad   :  { %v115_v42 = vadd.f32 %v114_v41, %v93_v40 }
  0xae   :  { %v179_v37 = vmul.f32 -1.442695, %v135_v36 }
  0xaf   :  { %v137_v46 = vmax.f32 %v115_v42, 0.0 }
  0xb0   :  { %186 = vpow2.f32 %v179_v37 }
  0xb1   :  { %v157_v51 = vsub.f32 %v137_v46, %v58_v30 }
  0xb6   :  { %v187_v38 = vpop.eup %186 }
  0xb7   :  { %v141_v39 = vadd.f32 1.0, %v187_v38 }
  0xb9   :  { %188 = vrcp.f32 %v141_v39  ;;  %v153_v47 = vand.u32 2147483648, %v141_v39  ;;  %v151_v49 = vand.u32 2147483647, %v141_v39  ;;  %vm147_vm1 = vweird.f32 %v141_v39 }
  0xbb   :  { %v154_v52 = vor.u32 1.1754944e-38, %v153_v47  ;;  %vm152_vm3 = vcmp.eq.f32.partialorder %v151_v49, 8.507059e+37 }
  0xbf   :  { %v189_v43 = vpop.eup %188 }
  0xc0   :  { %v143_v44 = vmul.f32 %v189_v43, %v141_v39  ;;  %vm148_vm0 = vweird.f32 %v189_v43 }
  0xc1   :  { %vm149_vm2 = vmor %vm147_vm1, %vm148_vm0 }
  0xc2   :  { %v144_v45 = vsub.f32 1.0, %v143_v44 }
  0xc4   :  { %v145_v48 = vmul.f32 %v189_v43, %v144_v45 }
  0xc6   :  { %v146_v50 = vadd.f32 %v189_v43, %v145_v48 }
  0xc8   :  { %v150_v53 = vsel %vm149_vm2, %v189_v43, %v146_v50 }
  0xc9   :  { %v155_v54 = vsel %vm152_vm3, %v154_v52, %v150_v53 }
  0xca   :  { %v158_v55 = vmul.f32 %v157_v51, %v155_v54 }
  0xcc   :  { %v159_v56 = vadd.f32 %v158_v55, %v58_v30 }
  0xce   :  { %160 = vst [vmem:[#allocation8] sm:$0xff] %v159_v56 }
  0xcf   :  { %171 = dma.vmem_to_hbm [thread:$0]  %s167_s2, 128, %s169_s30, [#allocation4]  }
  0xd0   :  { %290 = dma.done.wait [#allocation4], 128  }
  0xd1   :  { %291 = vsyncadd [#allocation4], 4294967168 }
  0xd2   :  { %176 = vsyncpa [#allocation3], 1 }
  0xd3   :  { %177 = vsyncpa [#allocation6], 1 }
  0xd4   :  { %178 = vsyncpa [#allocation4], 1 }

</bundles_post_ra>
